<compile_context>
chip_gen: v6e
topology: v6e:2x2x1
jax: 0.10.0
libtpu: 0.0.40
codegen_flags: <defaults>
</compile_context>

<pallas_src>
import functools

import jax
import jax.numpy as jnp
from jax.experimental import pallas as pl
from jax.experimental.pallas import tpu as pltpu

N_PAD = 128  # fc2 output padded from 10 -> 128 for a lane-dense store


def _round_up(x, m):
    return (x + m - 1) // m * m


def _choose_tm(B):
    """Batch tile size.

    B <= 256: one block covering the whole batch (block dim == full array dim is always legal).
    B >  256: TM is a multiple of 128 (aligned MXU M dim), capped at 512, and sized so the grid
              has >= 2 steps — the 'parallel' batch axis then shards across v7x's 2 TensorCores.
    """
    if B <= 256:
        return B
    return min(512, _round_up(pl.cdiv(B, 2), 128))


def _mlp_kernel(x_ref, w1_ref, b1_ref, w2_ref, b2_ref, o_ref):
    # Cast the f32 activation tile to bf16 in VMEM (keeps x HBM traffic to a single f32 read,
    # no wrapper-side bf16 copy), accumulate in f32 on the MXU, add biases in f32 on the VPU.
    x = x_ref[...].astype(jnp.bfloat16)
    h = jnp.dot(x, w1_ref[...], preferred_element_type=jnp.float32)
    h = jnp.maximum(h + b1_ref[...], 0.0)
    # dropout1: inference mode -> identity (PyTorch .eval() semantics).
    # TODO(synk): training-mode dropout (p=0.2) would need pltpu.prng_random_bits masking.
    out = jnp.dot(h.astype(jnp.bfloat16), w2_ref[...],
                  preferred_element_type=jnp.float32)
    o_ref[...] = (out + b2_ref[...]).astype(o_ref.dtype)


def prepare_params(w1, b1, w2, b2):
    """One-time parameter prep (cast/pad); keep the result around between forward calls."""
    w1_bf16 = w1.astype(jnp.bfloat16)                                  # (784, 512)
    b1_2d = b1.reshape(1, 512).astype(jnp.float32)                     # (1, 512)
    w2_pad = jnp.zeros((512, N_PAD), jnp.bfloat16).at[:, :10].set(     # (512, 128)
        w2.astype(jnp.bfloat16))
    b2_pad = jnp.zeros((1, N_PAD), jnp.float32).at[:, :10].set(        # (1, 128)
        b2.reshape(1, 10).astype(jnp.float32))
    return (w1_bf16, b1_2d, w2_pad, b2_pad)


@jax.jit
def simple_model_forward(x, params):
    """x: any shape flattening to (-1, 784). params: output of prepare_params.
    Returns (batch, 10) float32 logits."""
    w1_bf16, b1_2d, w2_pad, b2_pad = params
    x2d = x.reshape(-1, 784).astype(jnp.float32)
    B = x2d.shape[0]

    TM = _choose_tm(B)
    grid = (pl.cdiv(B, TM),)

    out_bf16 = pl.pallas_call(
        _mlp_kernel,
        out_shape=jax.ShapeDtypeStruct((B, N_PAD), jnp.bfloat16),
        grid=grid,
        in_specs=[
            pl.BlockSpec((TM, 784), lambda i: (i, 0)),      # x tile (pipelined over batch)
            pl.BlockSpec((784, 512), lambda i: (0, 0)),     # w1: constant index -> DMA'd once
            pl.BlockSpec((1, 512), lambda i: (0, 0)),       # b1
            pl.BlockSpec((512, N_PAD), lambda i: (0, 0)),   # w2 (column-padded)
            pl.BlockSpec((1, N_PAD), lambda i: (0, 0)),     # b2 (column-padded)
        ],
        out_specs=pl.BlockSpec((TM, N_PAD), lambda i: (i, 0)),
        compiler_params=pltpu.CompilerParams(
            dimension_semantics=("parallel",),
        ),
    )(x2d, w1_bf16, b1_2d, w2_pad, b2_pad)

    # Only the first 10 (real) columns are meaningful; upcast logits to f32 for downstream use.
    return out_bf16[:, :10].astype(jnp.float32)


def init_params(key):
    """Deterministic init mimicking PyTorch nn.Linear default (uniform +/- 1/sqrt(fan_in))."""
    k1, k2, k3, k4 = jax.random.split(key, 4)
    bound1 = 1.0 / jnp.sqrt(784.0)
    bound2 = 1.0 / jnp.sqrt(512.0)
    w1 = jax.random.uniform(k1, (784, 512), jnp.float32, -bound1, bound1)
    b1 = jax.random.uniform(k2, (512,), jnp.float32, -bound1, bound1)
    w2 = jax.random.uniform(k3, (512, 10), jnp.float32, -bound2, bound2)
    b2 = jax.random.uniform(k4, (10,), jnp.float32, -bound2, bound2)
    return w1, b1, w2, b2


if __name__ == "__main__":
    key = jax.random.PRNGKey(0)
    pkey, xkey = jax.random.split(key)
    w1, b1, w2, b2 = init_params(pkey)
    params = prepare_params(w1, b1, w2, b2)   # one-time prep, reused across calls

    # Example input: batch=2 MNIST-like images, NCHW (2, 1, 28, 28) -> view(-1, 784)
    x = jax.random.normal(xkey, (2, 1, 28, 28), jnp.float32)

    out = simple_model_forward(x, params)
    out = jax.block_until_ready(out)

    # Cross-check against plain f32 JAX reference (bf16 weights/activations -> looser tolerance).
    ref = jnp.maximum(x.reshape(-1, 784) @ w1 + b1, 0.0) @ w2 + b2
    assert out.shape == (2, 10)
    assert jnp.allclose(out, ref, atol=4e-2, rtol=4e-2), (
        f"max abs err = {jnp.max(jnp.abs(out - ref))}")

    print("KERNEL_OK")
</pallas_src>

<mosaic_0001>
module attributes {stable_mosaic.version = 11 : i64} {
  func.func @_mlp_kernel(%arg0: i32, %arg1: memref<2x784xf32, #tpu.memory_space<vmem>>, %arg2: memref<784x512xbf16, #tpu.memory_space<vmem>>, %arg3: memref<1x512xf32, #tpu.memory_space<vmem>>, %arg4: memref<512x128xbf16, #tpu.memory_space<vmem>>, %arg5: memref<1x128xf32, #tpu.memory_space<vmem>>, %arg6: memref<2x128xbf16, #tpu.memory_space<vmem>>) attributes {dimension_semantics = [#tpu.dimension_semantics<parallel>], iteration_bounds = array<i64: 1>, scalar_prefetch = 0 : i64, scratch_operands = 0 : i64, tpu.core_type = #tpu.core_type<tc>, window_params = [{transform_indices = @transform_0, window_bounds = array<i64: 2, 784>}, {pipeline_mode = #tpu.pipeline_mode<synchronous>, transform_indices = @transform_1, window_bounds = array<i64: 784, 512>}, {pipeline_mode = #tpu.pipeline_mode<synchronous>, transform_indices = @transform_2, window_bounds = array<i64: 1, 512>}, {pipeline_mode = #tpu.pipeline_mode<synchronous>, transform_indices = @transform_3, window_bounds = array<i64: 512, 128>}, {pipeline_mode = #tpu.pipeline_mode<synchronous>, transform_indices = @transform_4, window_bounds = array<i64: 1, 128>}, {transform_indices = @transform_5, window_bounds = array<i64: 2, 128>}]} {
    %c0 = arith.constant 0 : index
    %c0_0 = arith.constant 0 : index
    %0 = vector.load %arg1[%c0, %c0_0] : memref<2x784xf32, #tpu.memory_space<vmem>>, vector<2x784xf32>
    %1 = arith.truncf %0 : vector<2x784xf32> to vector<2x784xbf16>
    %c0_1 = arith.constant 0 : index
    %c0_2 = arith.constant 0 : index
    %2 = vector.load %arg2[%c0_1, %c0_2] : memref<784x512xbf16, #tpu.memory_space<vmem>>, vector<784x512xbf16>
    %cst = arith.constant dense<0.000000e+00> : vector<2x512xf32>
    %3 = tpu.matmul %1, %2, %cst {dimension_numbers = #tpu.dot_dimension_numbers<[1], [0], [0], [1], [0, 0, 1, 1], [], []>} : vector<2x784xbf16>, vector<784x512xbf16>, vector<2x512xf32> -> vector<2x512xf32>
    %c0_3 = arith.constant 0 : index
    %c0_4 = arith.constant 0 : index
    %4 = vector.load %arg3[%c0_3, %c0_4] : memref<1x512xf32, #tpu.memory_space<vmem>>, vector<1x512xf32>
    %5 = vector.broadcast %4 : vector<1x512xf32> to vector<2x512xf32>
    %6 = arith.addf %3, %5 : vector<2x512xf32>
    %cst_5 = arith.constant 0.000000e+00 : f32
    %7 = vector.broadcast %cst_5 : f32 to vector<2x512xf32>
    %8 = arith.maximumf %6, %7 : vector<2x512xf32>
    %9 = arith.truncf %8 : vector<2x512xf32> to vector<2x512xbf16>
    %c0_6 = arith.constant 0 : index
    %c0_7 = arith.constant 0 : index
    %10 = vector.load %arg4[%c0_6, %c0_7] : memref<512x128xbf16, #tpu.memory_space<vmem>>, vector<512x128xbf16>
    %cst_8 = arith.constant dense<0.000000e+00> : vector<2x128xf32>
    %11 = tpu.matmul %9, %10, %cst_8 {dimension_numbers = #tpu.dot_dimension_numbers<[1], [0], [0], [1], [0, 0, 1, 1], [], []>} : vector<2x512xbf16>, vector<512x128xbf16>, vector<2x128xf32> -> vector<2x128xf32>
    %c0_9 = arith.constant 0 : index
    %c0_10 = arith.constant 0 : index
    %12 = vector.load %arg5[%c0_9, %c0_10] : memref<1x128xf32, #tpu.memory_space<vmem>>, vector<1x128xf32>
    %13 = vector.broadcast %12 : vector<1x128xf32> to vector<2x128xf32>
    %14 = arith.addf %11, %13 : vector<2x128xf32>
    %15 = arith.truncf %14 : vector<2x128xf32> to vector<2x128xbf16>
    %c0_11 = arith.constant 0 : index
    %c0_12 = arith.constant 0 : index
    %16 = vector.load %arg6[%c0_11, %c0_12] : memref<2x128xbf16, #tpu.memory_space<vmem>>, vector<2x128xbf16>
    tpu.vector_store %arg6[%c0_11, %c0_12], %15 {strides = array<i32>} : memref<2x128xbf16, #tpu.memory_space<vmem>>, vector<2x128xbf16>,
    return
  }
  func.func @transform_0(%arg0: i32) -> (i32, i32) {
    %c0_i32 = arith.constant 0 : i32
    %c0_i32_0 = arith.constant 0 : i32
    return %arg0, %c0_i32 : i32, i32
  }
  func.func @transform_1(%arg0: i32) -> (i32, i32) {
    %c0_i32 = arith.constant 0 : i32
    %c0_i32_0 = arith.constant 0 : i32
    %c0_i32_1 = arith.constant 0 : i32
    return %c0_i32, %c0_i32_0 : i32, i32
  }
  func.func @transform_2(%arg0: i32) -> (i32, i32) {
    %c0_i32 = arith.constant 0 : i32
    %c0_i32_0 = arith.constant 0 : i32
    %c0_i32_1 = arith.constant 0 : i32
    return %c0_i32, %c0_i32_0 : i32, i32
  }
  func.func @transform_3(%arg0: i32) -> (i32, i32) {
    %c0_i32 = arith.constant 0 : i32
    %c0_i32_0 = arith.constant 0 : i32
    %c0_i32_1 = arith.constant 0 : i32
    return %c0_i32, %c0_i32_0 : i32, i32
  }
  func.func @transform_4(%arg0: i32) -> (i32, i32) {
    %c0_i32 = arith.constant 0 : i32
    %c0_i32_0 = arith.constant 0 : i32
    %c0_i32_1 = arith.constant 0 : i32
    return %c0_i32, %c0_i32_0 : i32, i32
  }
  func.func @transform_5(%arg0: i32) -> (i32, i32) {
    %c0_i32 = arith.constant 0 : i32
    %c0_i32_0 = arith.constant 0 : i32
    return %arg0, %c0_i32 : i32, i32
  }
}

</mosaic_0001>

<bundles_post_ra>
// kernel: simple_model_forward.1
= control target key start
LH: loop header
LB: loop body
LE: loop exit
PB: predicated region body
PF: predicated region fallthrough
CT: control target
= control target key end

     0   :  { %10 = vsyncpa [#allocation3], 0  ;;  %s2754_s0 = inlined_call_operand.vmem [shape: f32[2,784], index: 0, kind: input, shape index: {}]   ;;  %s2755_s1 = inlined_call_operand.hbm [shape: bf16[784,512], index: 1, kind: input, shape index: {}]   ;;  %s2756_s2 = inlined_call_operand.vmem [shape: f32[1,512], index: 2, kind: input, shape index: {}]   ;;  %s2757_s3 = inlined_call_operand.hbm [shape: bf16[512,128], index: 3, kind: input, shape index: {}]   ;;  %s2758_s4 = inlined_call_operand.vmem [shape: f32[1,128], index: 4, kind: input, shape index: {}]   ;;  %s2759_s5 = inlined_call_operand.vmem [shape: bf16[2,128], index: 5, kind: output, shape index: {}]  }
   0x1   :  { %11 = vsyncpa [#allocation5], 0  ;;  %s2644_s18 = smov [#allocation2]  }
   0x2   :  { %s19_s19 = sshll.u32 %s2644_s18, 4  ;;  %s20_s19 = int_to_ptr.vmem [resolvable:$true] %s19_s19 }
   0x3   :  { %s2608_s20 = scalar_lea.vmem %s20_s19, 25088  ;;  %p2613_p1 = scmp.lt.s32.totalorder %s20_s19, %s20_s19 }
   0x4   :  { %p2609_p0 = scmp.ne.s32.totalorder %s20_s19, %s2608_s20  ;;  %p2614_p2 = scmp.lt.s32.totalorder %s2608_s20, %s2608_s20 }
   0x6   :  { %p2615_p3 = por %p2614_p2, %p2613_p1 }
   0x8   :  { %p2616_p4 = pnand %p2615_p3, %p2609_p0 }
   0xa   :  { %2619 = shalt.err (!%p2616_p4)
}
   0xb   :  { %s2645_s21 = smov 256   ;;  %s2646_s22 = smov 16  }
   0xc   :  { %25 = dma.hbm_to_vmem [thread:$0]  %s2755_s1, 25088, %s20_s19, [#allocation3], %s2645_s21, %s2645_s21, %s2646_s22  }
   0xd   :  { %s2647_s25 = smov [#allocation4]  }
   0xe   :  { %s33_s26 = sshll.u32 %s2647_s25, 4  ;;  %s34_s26 = int_to_ptr.vmem [resolvable:$true] %s33_s26 }
   0xf   :  { %s2628_s27 = scalar_lea.vmem %s34_s26, 4096  ;;  %p2633_p6 = scmp.lt.s32.totalorder %s34_s26, %s34_s26 }
  0x10   :  { %p2629_p5 = scmp.ne.s32.totalorder %s34_s26, %s2628_s27  ;;  %p2634_p7 = scmp.lt.s32.totalorder %s2628_s27, %s2628_s27 }
  0x12   :  { %p2635_p8 = por %p2634_p7, %p2633_p6 }
  0x14   :  { %p2636_p9 = pnand %p2635_p8, %p2629_p5 }
  0x16   :  { %2639 = shalt.err (!%p2636_p9)
}
  0x17   :  { %s2648_s28 = smov 64   ;;  %s2649_s29 = smov 4  }
  0x18   :  { %39 = dma.hbm_to_vmem [thread:$0]  %s2757_s3, 4096, %s34_s26, [#allocation5], %s2648_s28, %s2648_s28, %s2649_s29  }
  0x19   :  { %2640 = dma.done.wait [#allocation3], 25088  }
  0x1a   :  { %2641 = vsyncadd [#allocation3], 4294942208 }
  0x1b   :  { %2642 = dma.done.wait [#allocation5], 4096  }
  0x1c   :  { %2643 = vsyncadd [#allocation5], 4294963200  ;;  %v2272_v0 = vld [vmem:[#allocation2 + $0xe4] ss:$16 sps:$4 sm:$0xff]   ;;  %v2276_v2 = vld [vmem:[#allocation2 + $0xe0] ss:$16 sps:$4 sm:$0xff]   ;;  %v57_v38 = vlaneseq }
  0x1d   :  { %v2274_v1 = vld [vmem:[#allocation2 + $0x2e4] ss:$16 sps:$4 sm:$0xff]   ;;  %1302 = vmatprep.subr.bf16.mxu0 %v2272_v0  ;;  %v2277_v3 = vld [vmem:[#allocation2 + $0x2e0] ss:$16 sps:$4 sm:$0xff]   ;;  %v2650_v36 = vmov 1983009808  }
  0x1e   :  { %1343 = vmatprep.subr.bf16.mxu1 %v2274_v1  ;;  %v2278_v4 = vld [vmem:[#allocation2 + $0xc4] ss:$16 sps:$4 sm:$0xff]   ;;  %1303 = vmatpush1.bf16.msra.mxu0 %v2276_v2  ;;  %v2282_v6 = vld [vmem:[#allocation2 + $0xc0] ss:$16 sps:$4 sm:$0xff]   ;;  %v55_v37 = vunpack.c.l.s4 %v2650_v36  ;;  %v2688_v43 = vshrl.u32 %v57_v38, 7  ;;  %vm1298_vm0 = vcmask 130048  }
  0x1f   :  { %1344 = vmatpush1.bf16.msra.mxu1 %v2277_v3  ;;  %v2280_v5 = vld [vmem:[#allocation2 + $0x2c4] ss:$16 sps:$4 sm:$0xff]   ;;  %1304 = vmatprep.subr.bf16.mxu0 %v2278_v4  ;;  %v2283_v7 = vld [vmem:[#allocation2 + $0x2c0] ss:$16 sps:$4 sm:$0xff]   ;;  %v2385_v36 = vld [vmem:[#allocation2 + $0xc8] ss:$16 sps:$4 sm:$0xff]  }
  0x20   :  { %1345 = vmatprep.subr.bf16.mxu1 %v2280_v5  ;;  %v2284_v8 = vld [vmem:[#allocation2 + $0xa4] ss:$16 sps:$4 sm:$0xff]   ;;  %v2288_v10 = vld [vmem:[#allocation2 + $0xa0] ss:$16 sps:$4 sm:$0xff]   ;;  %v56_v42 = vunpack.c.0.s8 %v55_v37  ;;  %v2393_v38 = vld [vmem:[#allocation2 + $0xac] ss:$16 sps:$4 sm:$0xff]  }
  0x21   :  { %v2286_v9 = vld [vmem:[#allocation2 + $0x2a4] ss:$16 sps:$4 sm:$0xff]   ;;  %v2289_v11 = vld [vmem:[#allocation2 + $0x2a0] ss:$16 sps:$4 sm:$0xff]  }
  0x22   :  { %1305 = vmatpush1.bf16.msra.mxu0 %v2282_v6  ;;  %v2290_v12 = vld [vmem:[#allocation2 + $0x84] ss:$16 sps:$4 sm:$0xff]   ;;  %v2294_v14 = vld [vmem:[#allocation2 + $0x80] ss:$16 sps:$4 sm:$0xff]   ;;  %v2691_v49 = vsub.s32 %v56_v42, %v2688_v43  ;;  %v2399_v42 = vld [vmem:[#allocation2 + $0x8c] ss:$16 sps:$4 sm:$0xff]  }
  0x23   :  { %1346 = vmatpush1.bf16.msra.mxu1 %v2283_v7  ;;  %1306 = vmatprep.subr.bf16.mxu0 %v2284_v8  ;;  %v2292_v13 = vld [vmem:[#allocation2 + $0x284] ss:$16 sps:$4 sm:$0xff]   ;;  %v2295_v15 = vld [vmem:[#allocation2 + $0x280] ss:$16 sps:$4 sm:$0xff]  }
  0x24   :  { %1347 = vmatprep.subr.bf16.mxu1 %v2286_v9  ;;  %v2296_v16 = vld [vmem:[#allocation2 + $0x64] ss:$16 sps:$4 sm:$0xff]   ;;  %v2300_v18 = vld [vmem:[#allocation2 + $0x60] ss:$16 sps:$4 sm:$0xff]  }
  0x25   :  { %v2298_v17 = vld [vmem:[#allocation2 + $0x264] ss:$16 sps:$4 sm:$0xff]   ;;  %v2301_v19 = vld [vmem:[#allocation2 + $0x260] ss:$16 sps:$4 sm:$0xff]  }
  0x26   :  { %1307 = vmatpush1.bf16.msra.mxu0 %v2288_v10  ;;  %v2302_v20 = vld [vmem:[#allocation2 + $0x44] ss:$16 sps:$4 sm:$0xff]   ;;  %v2306_v22 = vld [vmem:[#allocation2 + $0x40] ss:$16 sps:$4 sm:$0xff]  }
  0x27   :  { %1348 = vmatpush1.bf16.msra.mxu1 %v2289_v11  ;;  %1308 = vmatprep.subr.bf16.mxu0 %v2290_v12  ;;  %v2304_v21 = vld [vmem:[#allocation2 + $0x244] ss:$16 sps:$4 sm:$0xff]   ;;  %v2307_v23 = vld [vmem:[#allocation2 + $0x240] ss:$16 sps:$4 sm:$0xff]   ;;  %v50_v12 = vld [vmem:[%s2754_s0 + $0x8] sm:$0x3f] }
  0x28   :  { %1349 = vmatprep.subr.bf16.mxu1 %v2292_v13  ;;  %v2308_v24 = vld [vmem:[#allocation2 + $0x24] ss:$16 sps:$4 sm:$0xff]   ;;  %v2312_v26 = vld [vmem:[#allocation2 + $0x20] ss:$16 sps:$4 sm:$0xff]   ;;  %v2708_v13 = vrot.slane %v50_v12, %v2691_v49 }
  0x29   :  { %v2310_v25 = vld [vmem:[#allocation2 + $0x224] ss:$16 sps:$4 sm:$0xff]   ;;  %v2313_v27 = vld [vmem:[#allocation2 + $0x220] ss:$16 sps:$4 sm:$0xff]  }
  0x2a   :  { %1309 = vmatpush1.bf16.msra.mxu0 %v2294_v14  ;;  %v2314_v28 = vld [vmem:[#allocation2 + $0x4] ss:$16 sps:$4 sm:$0xff]   ;;  %v2318_v30 = vld [vmem:[#allocation2] ss:$16 sps:$4 sm:$0xff]  }
  0x2b   :  { %1350 = vmatpush1.bf16.msra.mxu1 %v2295_v15  ;;  %1310 = vmatprep.subr.bf16.mxu0 %v2296_v16  ;;  %v2316_v29 = vld [vmem:[#allocation2 + $0x204] ss:$16 sps:$4 sm:$0xff]   ;;  %v2319_v31 = vld [vmem:[#allocation2 + $0x200] ss:$16 sps:$4 sm:$0xff]  }
  0x2c   :  { %1351 = vmatprep.subr.bf16.mxu1 %v2298_v17  ;;  %v2320_v32 = vld [vmem:[#allocation2 + $0x1e4] ss:$16 sps:$4 sm:$0xff]   ;;  %v2324_v34 = vld [vmem:[#allocation2 + $0x1e0] ss:$16 sps:$4 sm:$0xff]  }
  0x2d   :  { %v2322_v33 = vld [vmem:[#allocation2 + $0x3e4] ss:$16 sps:$4 sm:$0xff]   ;;  %v2325_v35 = vld [vmem:[#allocation2 + $0x3e0] ss:$16 sps:$4 sm:$0xff]  }
  0x2e   :  { %1311 = vmatpush1.bf16.msra.mxu0 %v2300_v18  ;;  %v2326_v39 = vld [vmem:[#allocation2 + $0x1c4] ss:$16 sps:$4 sm:$0xff]   ;;  %v2330_v41 = vld [vmem:[#allocation2 + $0x1c0] ss:$16 sps:$4 sm:$0xff]   ;;  %v85_v18 = vcombine.high %v2708_v13, %v2708_v13 }
  0x2f   :  { %1352 = vmatpush1.bf16.msra.mxu1 %v2301_v19  ;;  %1312 = vmatprep.subr.bf16.mxu0 %v2302_v20  ;;  %v2328_v40 = vld [vmem:[#allocation2 + $0x3c4] ss:$16 sps:$4 sm:$0xff]   ;;  %v2331_v44 = vld [vmem:[#allocation2 + $0x3c0] ss:$16 sps:$4 sm:$0xff]  }
  0x30   :  { %1353 = vmatprep.subr.bf16.mxu1 %v2304_v21  ;;  %v2332_v45 = vld [vmem:[#allocation2 + $0x1a4] ss:$16 sps:$4 sm:$0xff]   ;;  %v2336_v47 = vld [vmem:[#allocation2 + $0x1a0] ss:$16 sps:$4 sm:$0xff]   ;;  %v70_v21 = vcombine.high %v50_v12, %v50_v12  ;;  %v2447_v12 = vld [vmem:[#allocation2 + $0x18c] ss:$16 sps:$4 sm:$0xff]  }
  0x31   :  { %v2334_v46 = vld [vmem:[#allocation2 + $0x3a4] ss:$16 sps:$4 sm:$0xff]   ;;  %v2337_v48 = vld [vmem:[#allocation2 + $0x3a0] ss:$16 sps:$4 sm:$0xff]  }
  0x32   :  { %1313 = vmatpush1.bf16.msra.mxu0 %v2306_v22  ;;  %v2338_v50 = vld [vmem:[#allocation2 + $0x184] ss:$16 sps:$4 sm:$0xff]   ;;  %v2342_v53 = vld [vmem:[#allocation2 + $0x180] ss:$16 sps:$4 sm:$0xff]  }
  0x33   :  { %1354 = vmatpush1.bf16.msra.mxu1 %v2307_v23  ;;  %1314 = vmatprep.subr.bf16.mxu0 %v2308_v24  ;;  %v2340_v51 = vld [vmem:[#allocation2 + $0x384] ss:$16 sps:$4 sm:$0xff]   ;;  %v2343_v56 = vld [vmem:[#allocation2 + $0x380] ss:$16 sps:$4 sm:$0xff]  }
  0x34   :  { %1355 = vmatprep.subr.bf16.mxu1 %v2310_v25  ;;  %v49_v52 = vld [vmem:[%s2754_s0] sm:$0xff]  ;;  %v2380_v25 = vld [vmem:[#allocation2 + $0xec] ss:$16 sps:$4 sm:$0xff]  }
  0x35   :  { %v60_v54 = vrot.slane %v49_v52, %v2691_v49  ;;  %v53_v55 = vcombine.high %v49_v52, %v49_v52  ;;  %v2344_v57 = vld [vmem:[#allocation2 + $0x164] ss:$16 sps:$4 sm:$0xff]   ;;  %v2348_v61 = vld [vmem:[#allocation2 + $0x160] ss:$16 sps:$4 sm:$0xff]  }
  0x36   :  { %1315 = vmatpush1.bf16.msra.mxu0 %v2312_v26  ;;  %v2346_v58 = vld [vmem:[#allocation2 + $0x364] ss:$16 sps:$4 sm:$0xff]   ;;  %v2349_v0 = vld [vmem:[#allocation2 + $0x360] ss:$16 sps:$4 sm:$0xff]   ;;  %v2716_v26 = vpack.c.bf16 %v85_v18, %v85_v18 }
  0x37   :  { %1356 = vmatpush1.bf16.msra.mxu1 %v2313_v27  ;;  %1316 = vmatprep.subr.bf16.mxu0 %v2314_v28  ;;  %v68_v59 = vcombine.high %v60_v54, %v60_v54  ;;  %v67_v60 = vrot.slane %v53_v55, %v2691_v49  ;;  %v2350_v1 = vld [vmem:[#allocation2 + $0x144] ss:$16 sps:$4 sm:$0xff]   ;;  %v2354_v4 = vld [vmem:[#allocation2 + $0x140] ss:$16 sps:$4 sm:$0xff]   ;;  %v2712_v19 = vpack.c.bf16 %v60_v54, %v60_v54  ;;  %v2417_v55 = vld [vmem:[#allocation2 + $0x2c] ss:$16 sps:$4 sm:$0xff]  }
  0x38   :  { %1357 = vmatprep.subr.bf16.mxu1 %v2316_v29  ;;  %v2352_v2 = vld [vmem:[#allocation2 + $0x344] ss:$16 sps:$4 sm:$0xff]   ;;  %v2355_v5 = vld [vmem:[#allocation2 + $0x340] ss:$16 sps:$4 sm:$0xff]   ;;  %v84_v27 = vrot.slane %v70_v21, %v2691_v49  ;;  %v2651_v29 = vmov 0  }
  0x39   :  { %v2698_v62 = vpack.c.bf16 %v68_v59, %v68_v59  ;;  %v69_v63 = vcombine.high %v67_v60, %v67_v60  ;;  %v2356_v6 = vld [vmem:[#allocation2 + $0x124] ss:$16 sps:$4 sm:$0xff]   ;;  %v2360_v8 = vld [vmem:[#allocation2 + $0x120] ss:$16 sps:$4 sm:$0xff]   ;;  %v2714_v20 = vpack.c.bf16 %v67_v60, %v67_v60  ;;  %v2403_v49 = vld [vmem:[#allocation2 + $0x68] ss:$16 sps:$4 sm:$0xff]  }
  0x3a   :  { %1317 = vmatpush1.bf16.msra.mxu0 %v2318_v30  ;;  %v2358_v7 = vld [vmem:[#allocation2 + $0x324] ss:$16 sps:$4 sm:$0xff]   ;;  %v2361_v9 = vld [vmem:[#allocation2 + $0x320] ss:$16 sps:$4 sm:$0xff]   ;;  %v2423_v59 = vld [vmem:[#allocation2 + $0xc] ss:$16 sps:$4 sm:$0xff]  }
  0x3b   :  { %1358 = vmatpush1.bf16.msra.mxu1 %v2319_v31  ;;  %1318 = vmatprep.subr.bf16.mxu0 %v2320_v32  ;;  %v2700_v3 = vpack.c.bf16 %v69_v63, %v69_v63  ;;  %v2362_v10 = vld [vmem:[#allocation2 + $0x104] ss:$16 sps:$4 sm:$0xff]   ;;  %v2366_v14 = vld [vmem:[#allocation2 + $0x100] ss:$16 sps:$4 sm:$0xff]   ;;  %v2723_v31 = vpack.c.bf16 %v84_v27, %v84_v27  ;;  %v2378_v32 = vld [vmem:[#allocation2 + $0xe8] ss:$16 sps:$4 sm:$0xff]  }
  0x3c   :  { %1359 = vmatprep.subr.bf16.mxu1 %v2322_v33  ;;  %1334 = vmatprep.mubr.bf16.mxu0 %v2698_v62  ;;  %v2364_v11 = vld [vmem:[#allocation2 + $0x304] ss:$16 sps:$4 sm:$0xff]   ;;  %v2367_v15 = vld [vmem:[#allocation2 + $0x300] ss:$16 sps:$4 sm:$0xff]   ;;  %v2429_v63 = vld [vmem:[#allocation2 + $0x1ec] ss:$16 sps:$4 sm:$0xff]  }
  0x3d   :  { %1375 = vmatprep.mubr.bf16.mxu1 %v2700_v3  ;;  %v2371_v16 = vld [vmem:[#allocation2 + $0x4e4] ss:$16 sps:$4 sm:$0xff]   ;;  %v2369_v22 = vld [vmem:[#allocation2 + $0x4e0] ss:$16 sps:$4 sm:$0xff]   ;;  %v2451_v21 = vld [vmem:[#allocation2 + $0x168] ss:$16 sps:$4 sm:$0xff]  }
  0x3e   :  { %1319 = vmatpush2.bf16.msra.mxu0 %v2324_v34  ;;  %v2374_v17 = vld [vmem:[#allocation2 + $0x604] ss:$16 sps:$4 sm:$0xff]   ;;  %v2372_v23 = vld [vmem:[#allocation2 + $0x600] ss:$16 sps:$4 sm:$0xff]   ;;  %v2387_v34 = vld [vmem:[#allocation2 + $0xcc] ss:$16 sps:$4 sm:$0xff]  }
  0x3f   :  { %1360 = vmatpush2.bf16.msra.mxu1 %v2325_v35  ;;  %1320 = vmatprep.subr.bf16.mxu0 %v2326_v39  ;;  %v2377_v24 = vld [vmem:[#allocation2 + $0x4c4] ss:$16 sps:$4 sm:$0xff]   ;;  %v2375_v28 = vld [vmem:[#allocation2 + $0x4c0] ss:$16 sps:$4 sm:$0xff]  }
  0x40   :  { %1361 = vmatprep.subr.bf16.mxu1 %v2328_v40  ;;  %v2383_v30 = vld [vmem:[#allocation2 + $0x4a4] ss:$16 sps:$4 sm:$0xff]   ;;  %v2381_v33 = vld [vmem:[#allocation2 + $0x4a0] ss:$16 sps:$4 sm:$0xff]   ;;  %v2391_v40 = vld [vmem:[#allocation2 + $0xa8] ss:$16 sps:$4 sm:$0xff]  }
  0x41   :  { %v2390_v35 = vld [vmem:[#allocation2 + $0x484] ss:$16 sps:$4 sm:$0xff]   ;;  %v2388_v37 = vld [vmem:[#allocation2 + $0x480] ss:$16 sps:$4 sm:$0xff]  }
  0x42   :  { %1321 = vmatpush2.bf16.msra.mxu0 %v2330_v41  ;;  %v2396_v39 = vld [vmem:[#allocation2 + $0x464] ss:$16 sps:$4 sm:$0xff]   ;;  %v2394_v41 = vld [vmem:[#allocation2 + $0x460] ss:$16 sps:$4 sm:$0xff]  }
  0x43   :  { %1362 = vmatpush2.bf16.msra.mxu1 %v2331_v44  ;;  %1322 = vmatprep.subr.bf16.mxu0 %v2332_v45  ;;  %v2402_v44 = vld [vmem:[#allocation2 + $0x444] ss:$16 sps:$4 sm:$0xff]   ;;  %v2397_v45 = vld [vmem:[#allocation2 + $0x88] ss:$16 sps:$4 sm:$0xff]   ;;  %v2412_v54 = vld [vmem:[#allocation2 + $0x400] ss:$16 sps:$4 sm:$0xff]  }
  0x44   :  { %1363 = vmatprep.subr.bf16.mxu1 %v2334_v46  ;;  %v2400_v46 = vld [vmem:[#allocation2 + $0x440] ss:$16 sps:$4 sm:$0xff]   ;;  %v2414_v52 = vld [vmem:[#allocation2 + $0x404] ss:$16 sps:$4 sm:$0xff]  }
  0x45   :  { %v2426_v60 = vld [vmem:[#allocation2 + $0x5c4] ss:$16 sps:$4 sm:$0xff]   ;;  %v2460_v27 = vld [vmem:[#allocation2 + $0x500] ss:$16 sps:$4 sm:$0xff]  }
  0x46   :  { %1323 = vmatpush2.bf16.msra.mxu0 %v2336_v47  ;;  %v2405_v47 = vld [vmem:[#allocation2 + $0x6c] ss:$16 sps:$4 sm:$0xff]   ;;  %v2456_v18 = vld [vmem:[#allocation2 + $0x524] ss:$16 sps:$4 sm:$0xff]  }
  0x47   :  { %1364 = vmatpush2.bf16.msra.mxu1 %v2337_v48  ;;  %1324 = vmatprep.subr.bf16.mxu0 %v2338_v50  ;;  %v2408_v48 = vld [vmem:[#allocation2 + $0x424] ss:$16 sps:$4 sm:$0xff]   ;;  %v2406_v50 = vld [vmem:[#allocation2 + $0x420] ss:$16 sps:$4 sm:$0xff]  }
  0x48   :  { %1365 = vmatprep.subr.bf16.mxu1 %v2340_v51  ;;  %v2411_v51 = vld [vmem:[#allocation2 + $0x4c] ss:$16 sps:$4 sm:$0xff]  }
  0x4a   :  { %1325 = vmatpush2.bf16.msra.mxu0 %v2342_v53  ;;  %v2409_v53 = vld [vmem:[#allocation2 + $0x48] ss:$16 sps:$4 sm:$0xff]  }
  0x4b   :  { %1366 = vmatpush2.bf16.msra.mxu1 %v2343_v56  ;;  %1326 = vmatprep.subr.bf16.mxu0 %v2344_v57  ;;  %v2420_v56 = vld [vmem:[#allocation2 + $0x5e4] ss:$16 sps:$4 sm:$0xff]   ;;  %v2415_v57 = vld [vmem:[#allocation2 + $0x28] ss:$16 sps:$4 sm:$0xff]  }
  0x4c   :  { %1367 = vmatprep.subr.bf16.mxu1 %v2346_v58  ;;  %v2418_v58 = vld [vmem:[#allocation2 + $0x5e0] ss:$16 sps:$4 sm:$0xff]  }
  0x4e   :  { %1327 = vmatpush2.bf16.msra.mxu0 %v2348_v61  ;;  %v2421_v61 = vld [vmem:[#allocation2 + $0x8] ss:$16 sps:$4 sm:$0xff]  }
  0x4f   :  { %1368 = vmatpush2.bf16.msra.mxu1 %v2349_v0  ;;  %1328 = vmatprep.subr.bf16.mxu0 %v2350_v1  ;;  %v2432_v0 = vld [vmem:[#allocation2 + $0x5a4] ss:$16 sps:$4 sm:$0xff]   ;;  %v2427_v1 = vld [vmem:[#allocation2 + $0x1e8] ss:$16 sps:$4 sm:$0xff]  }
  0x50   :  { %1369 = vmatprep.subr.bf16.mxu1 %v2352_v2  ;;  %v2430_v2 = vld [vmem:[#allocation2 + $0x5a0] ss:$16 sps:$4 sm:$0xff]  }
  0x52   :  { %1329 = vmatpush2.bf16.msra.mxu0 %v2354_v4  ;;  %v2435_v4 = vld [vmem:[#allocation2 + $0x1cc] ss:$16 sps:$4 sm:$0xff]  }
  0x53   :  { %1370 = vmatpush2.bf16.msra.mxu1 %v2355_v5  ;;  %1330 = vmatprep.subr.bf16.mxu0 %v2356_v6  ;;  %v2438_v5 = vld [vmem:[#allocation2 + $0x584] ss:$16 sps:$4 sm:$0xff]   ;;  %v2433_v6 = vld [vmem:[#allocation2 + $0x1c8] ss:$16 sps:$4 sm:$0xff]  }
  0x54   :  { %1371 = vmatprep.subr.bf16.mxu1 %v2358_v7  ;;  %v2436_v7 = vld [vmem:[#allocation2 + $0x580] ss:$16 sps:$4 sm:$0xff]  }
  0x56   :  { %1331 = vmatpush2.bf16.msra.mxu0 %v2360_v8  ;;  %v2441_v8 = vld [vmem:[#allocation2 + $0x1ac] ss:$16 sps:$4 sm:$0xff]  }
  0x57   :  { %1372 = vmatpush2.bf16.msra.mxu1 %v2361_v9  ;;  %1332 = vmatprep.subr.bf16.mxu0 %v2362_v10  ;;  %v2444_v9 = vld [vmem:[#allocation2 + $0x564] ss:$16 sps:$4 sm:$0xff]   ;;  %v2439_v10 = vld [vmem:[#allocation2 + $0x1a8] ss:$16 sps:$4 sm:$0xff]  }
  0x58   :  { %1373 = vmatprep.subr.bf16.mxu1 %v2364_v11  ;;  %v2442_v11 = vld [vmem:[#allocation2 + $0x560] ss:$16 sps:$4 sm:$0xff]  }
  0x5a   :  { %1333 = vmatpush2.bf16.msra.mxu0 %v2366_v14  ;;  %v2450_v14 = vld [vmem:[#allocation2 + $0x544] ss:$16 sps:$4 sm:$0xff]  }
  0x5b   :  { %1374 = vmatpush2.bf16.msra.mxu1 %v2367_v15  ;;  %1384 = vmatprep.subr.bf16.mxu0 %v2371_v16  ;;  %v2445_v15 = vld [vmem:[#allocation2 + $0x188] ss:$16 sps:$4 sm:$0xff]   ;;  %v2448_v16 = vld [vmem:[#allocation2 + $0x540] ss:$16 sps:$4 sm:$0xff]  }
  0x5c   :  { %1439 = vmatprep.subr.bf16.mxu1 %v2374_v17  ;;  %v2453_v17 = vld [vmem:[#allocation2 + $0x16c] ss:$16 sps:$4 sm:$0xff]  }
  0x5d   :  { %1335 = vmatmul.mubr.bf16.vlgmr.msra.gmra.mxu0 %v2712_v19 }
  0x5e   :  { %1376 = vmatmul.mubr.bf16.vlgmr.msra.gmra.mxu1 %v2714_v20  ;;  %1385 = vmatpush1.bf16.msra.mxu0 %v2369_v22  ;;  %v2454_v22 = vld [vmem:[#allocation2 + $0x520] ss:$16 sps:$4 sm:$0xff]  }
  0x5f   :  { %1440 = vmatpush1.bf16.msra.mxu1 %v2372_v23  ;;  %1386 = vmatprep.subr.bf16.mxu0 %v2377_v24  ;;  %v2459_v23 = vld [vmem:[#allocation2 + $0x14c] ss:$16 sps:$4 sm:$0xff]   ;;  %v2462_v24 = vld [vmem:[#allocation2 + $0x504] ss:$16 sps:$4 sm:$0xff]  }
  0x60   :  { %1457 = vmatprep.mubr.bf16.mxu1 %v2651_v29  ;;  %1466 = vmatprep.subr.bf16.mxu1 %v2380_v25  ;;  %v2457_v25 = vld [vmem:[#allocation2 + $0x148] ss:$16 sps:$4 sm:$0xff]  }
  0x61   :  { %1416 = vmatprep.mubr.bf16.mxu0 %v2716_v26 }
  0x62   :  { %1387 = vmatpush1.bf16.msra.mxu0 %v2375_v28  ;;  %v2465_v28 = vld [vmem:[#allocation2 + $0x12c] ss:$16 sps:$4 sm:$0xff]  }
  0x63   :  { %1388 = vmatprep.subr.bf16.mxu0 %v2383_v30  ;;  %v2468_v30 = vld [vmem:[#allocation2 + $0x2ec] ss:$16 sps:$4 sm:$0xff]  }
  0x66   :  { %2185 = vmatmul.mubr.msk.bf16.vlgmr.msra.gmra.mxu1 %vm1298_vm0, %v2723_v31  ;;  %1389 = vmatpush1.bf16.msra.mxu0 %v2381_v33  ;;  %v2463_v33 = vld [vmem:[#allocation2 + $0x128] ss:$16 sps:$4 sm:$0xff]  }
  0x67   :  { %1467 = vmatpush1.bf16.msra.mxu1 %v2378_v32  ;;  %1390 = vmatprep.subr.bf16.mxu0 %v2390_v35  ;;  %v2730_v32 = vpack.c.bf16 %v2708_v13, %v2708_v13  ;;  %v2471_v35 = vld [vmem:[#allocation2 + $0x10c] ss:$16 sps:$4 sm:$0xff]   ;;  %v2475_v13 = vld [vmem:[#allocation2 + $0x4e8] ss:$16 sps:$4 sm:$0xff]  }
  0x68   :  { %1468 = vmatprep.subr.bf16.mxu1 %v2387_v34  ;;  %1498 = vmatprep.mubr.bf16.mxu1 %v2698_v62  ;;  %v2424_v62 = vld [vmem:[#allocation2 + $0x5c0] ss:$16 sps:$4 sm:$0xff]   ;;  %v2466_v34 = vld [vmem:[#allocation2 + $0x2e8] ss:$16 sps:$4 sm:$0xff]  }
  0x6a   :  { %1391 = vmatpush1.bf16.msra.mxu0 %v2388_v37  ;;  %v2469_v37 = vld [vmem:[#allocation2 + $0x108] ss:$16 sps:$4 sm:$0xff]  }
  0x6b   :  { %1469 = vmatpush1.bf16.msra.mxu1 %v2385_v36  ;;  %1392 = vmatprep.subr.bf16.mxu0 %v2396_v39  ;;  %v2474_v36 = vld [vmem:[#allocation2 + $0x2cc] ss:$16 sps:$4 sm:$0xff]  }
  0x6c   :  { %1470 = vmatprep.subr.bf16.mxu1 %v2393_v38  ;;  %v2472_v38 = vld [vmem:[#allocation2 + $0x2c8] ss:$16 sps:$4 sm:$0xff]   ;;  %v2477_v39 = vld [vmem:[#allocation2 + $0x4ec] ss:$16 sps:$4 sm:$0xff]  }
  0x6e   :  { %1393 = vmatpush1.bf16.msra.mxu0 %v2394_v41  ;;  %v2478_v41 = vld [vmem:[#allocation2 + $0x2a8] ss:$16 sps:$4 sm:$0xff]  }
  0x6f   :  { %1471 = vmatpush1.bf16.msra.mxu1 %v2391_v40  ;;  %1394 = vmatprep.subr.bf16.mxu0 %v2402_v44  ;;  %v2480_v40 = vld [vmem:[#allocation2 + $0x2ac] ss:$16 sps:$4 sm:$0xff]  }
  0x70   :  { %1472 = vmatprep.subr.bf16.mxu1 %v2399_v42  ;;  %v2483_v42 = vld [vmem:[#allocation2 + $0x4cc] ss:$16 sps:$4 sm:$0xff]  }
  0x71   :  { %v2486_v44 = vld [vmem:[#allocation2 + $0x28c] ss:$16 sps:$4 sm:$0xff]  }
  0x72   :  { %1395 = vmatpush1.bf16.msra.mxu0 %v2400_v46  ;;  %v2484_v46 = vld [vmem:[#allocation2 + $0x288] ss:$16 sps:$4 sm:$0xff]  }
  0x73   :  { %1473 = vmatpush1.bf16.msra.mxu1 %v2397_v45  ;;  %1396 = vmatprep.subr.bf16.mxu0 %v2408_v48  ;;  %v2481_v45 = vld [vmem:[#allocation2 + $0x4c8] ss:$16 sps:$4 sm:$0xff]   ;;  %v2492_v48 = vld [vmem:[#allocation2 + $0x26c] ss:$16 sps:$4 sm:$0xff]  }
  0x74   :  { %1474 = vmatprep.subr.bf16.mxu1 %v2405_v47  ;;  %v2489_v47 = vld [vmem:[#allocation2 + $0x4ac] ss:$16 sps:$4 sm:$0xff]  }
  0x76   :  { %1397 = vmatpush1.bf16.msra.mxu0 %v2406_v50  ;;  %v2490_v50 = vld [vmem:[#allocation2 + $0x268] ss:$16 sps:$4 sm:$0xff]  }
  0x77   :  { %1475 = vmatpush1.bf16.msra.mxu1 %v2403_v49  ;;  %1398 = vmatprep.subr.bf16.mxu0 %v2414_v52  ;;  %v2487_v49 = vld [vmem:[#allocation2 + $0x4a8] ss:$16 sps:$4 sm:$0xff]  }
  0x78   :  { %1476 = vmatprep.subr.bf16.mxu1 %v2411_v51  ;;  %v2498_v51 = vld [vmem:[#allocation2 + $0x24c] ss:$16 sps:$4 sm:$0xff]   ;;  %v2493_v52 = vld [vmem:[#allocation2 + $0x488] ss:$16 sps:$4 sm:$0xff]  }
  0x7a   :  { %1399 = vmatpush1.bf16.msra.mxu0 %v2412_v54  ;;  %v2501_v54 = vld [vmem:[#allocation2 + $0x46c] ss:$16 sps:$4 sm:$0xff]  }
  0x7b   :  { %1477 = vmatpush1.bf16.msra.mxu1 %v2409_v53  ;;  %1400 = vmatprep.subr.bf16.mxu0 %v2420_v56  ;;  %v2496_v53 = vld [vmem:[#allocation2 + $0x248] ss:$16 sps:$4 sm:$0xff]  }
  0x7c   :  { %1478 = vmatprep.subr.bf16.mxu1 %v2417_v55  ;;  %v2499_v55 = vld [vmem:[#allocation2 + $0x468] ss:$16 sps:$4 sm:$0xff]  }
  0x7d   :  { %v2502_v56 = vld [vmem:[#allocation2 + $0x228] ss:$16 sps:$4 sm:$0xff]  }
  0x7e   :  { %1401 = vmatpush2.bf16.msra.mxu0 %v2418_v58  ;;  %v2510_v58 = vld [vmem:[#allocation2 + $0x20c] ss:$16 sps:$4 sm:$0xff]  }
  0x7f   :  { %1479 = vmatpush1.bf16.msra.mxu1 %v2415_v57  ;;  %1402 = vmatprep.subr.bf16.mxu0 %v2426_v60  ;;  %v2507_v57 = vld [vmem:[#allocation2 + $0x44c] ss:$16 sps:$4 sm:$0xff]  }
  0x80   :  { %1480 = vmatprep.subr.bf16.mxu1 %v2423_v59  ;;  %v2508_v59 = vld [vmem:[#allocation2 + $0x208] ss:$16 sps:$4 sm:$0xff]   ;;  %v2513_v60 = vld [vmem:[#allocation2 + $0x42c] ss:$16 sps:$4 sm:$0xff]  }
  0x82   :  { %1403 = vmatpush2.bf16.msra.mxu0 %v2424_v62  ;;  %v2511_v62 = vld [vmem:[#allocation2 + $0x428] ss:$16 sps:$4 sm:$0xff]  }
  0x83   :  { %1481 = vmatpush1.bf16.msra.mxu1 %v2421_v61  ;;  %1404 = vmatprep.subr.bf16.mxu0 %v2432_v0  ;;  %v2516_v61 = vld [vmem:[#allocation2 + $0x3ec] ss:$16 sps:$4 sm:$0xff]  }
  0x84   :  { %1482 = vmatprep.subr.bf16.mxu1 %v2429_v63  ;;  %v2514_v63 = vld [vmem:[#allocation2 + $0x3e8] ss:$16 sps:$4 sm:$0xff]   ;;  %v2519_v0 = vld [vmem:[#allocation2 + $0x40c] ss:$16 sps:$4 sm:$0xff]  }
  0x86   :  { %1405 = vmatpush2.bf16.msra.mxu0 %v2430_v2  ;;  %v2517_v2 = vld [vmem:[#allocation2 + $0x408] ss:$16 sps:$4 sm:$0xff]  }
  0x87   :  { %1483 = vmatpush2.bf16.msra.mxu1 %v2427_v1  ;;  %1406 = vmatprep.subr.bf16.mxu0 %v2438_v5  ;;  %v2522_v1 = vld [vmem:[#allocation2 + $0x3cc] ss:$16 sps:$4 sm:$0xff]  }
  0x88   :  { %1484 = vmatprep.subr.bf16.mxu1 %v2435_v4  ;;  %v2520_v4 = vld [vmem:[#allocation2 + $0x3c8] ss:$16 sps:$4 sm:$0xff]   ;;  %v2525_v5 = vld [vmem:[#allocation2 + $0x5ec] ss:$16 sps:$4 sm:$0xff]  }
  0x8a   :  { %1407 = vmatpush2.bf16.msra.mxu0 %v2436_v7  ;;  %v2523_v7 = vld [vmem:[#allocation2 + $0x5e8] ss:$16 sps:$4 sm:$0xff]  }
  0x8b   :  { %1485 = vmatpush2.bf16.msra.mxu1 %v2433_v6  ;;  %1408 = vmatprep.subr.bf16.mxu0 %v2444_v9  ;;  %v2528_v6 = vld [vmem:[#allocation2 + $0x3ac] ss:$16 sps:$4 sm:$0xff]  }
  0x8c   :  { %1486 = vmatprep.subr.bf16.mxu1 %v2441_v8  ;;  %v2526_v8 = vld [vmem:[#allocation2 + $0x3a8] ss:$16 sps:$4 sm:$0xff]   ;;  %v2531_v9 = vld [vmem:[#allocation2 + $0x5cc] ss:$16 sps:$4 sm:$0xff]  }
  0x8e   :  { %1409 = vmatpush2.bf16.msra.mxu0 %v2442_v11  ;;  %v2529_v11 = vld [vmem:[#allocation2 + $0x5c8] ss:$16 sps:$4 sm:$0xff]  }
  0x8f   :  { %1487 = vmatpush2.bf16.msra.mxu1 %v2439_v10  ;;  %1410 = vmatprep.subr.bf16.mxu0 %v2450_v14  ;;  %v2534_v10 = vld [vmem:[#allocation2 + $0x38c] ss:$16 sps:$4 sm:$0xff]  }
  0x90   :  { %1488 = vmatprep.subr.bf16.mxu1 %v2447_v12  ;;  %v2532_v12 = vld [vmem:[#allocation2 + $0x388] ss:$16 sps:$4 sm:$0xff]   ;;  %v2537_v14 = vld [vmem:[#allocation2 + $0x5ac] ss:$16 sps:$4 sm:$0xff]  }
  0x92   :  { %1411 = vmatpush2.bf16.msra.mxu0 %v2448_v16  ;;  %v2535_v16 = vld [vmem:[#allocation2 + $0x5a8] ss:$16 sps:$4 sm:$0xff]  }
  0x93   :  { %1489 = vmatpush2.bf16.msra.mxu1 %v2445_v15  ;;  %1412 = vmatprep.subr.bf16.mxu0 %v2456_v18  ;;  %v2540_v15 = vld [vmem:[#allocation2 + $0x36c] ss:$16 sps:$4 sm:$0xff]  }
  0x94   :  { %1490 = vmatprep.subr.bf16.mxu1 %v2453_v17  ;;  %v2538_v17 = vld [vmem:[#allocation2 + $0x368] ss:$16 sps:$4 sm:$0xff]   ;;  %v2543_v18 = vld [vmem:[#allocation2 + $0x58c] ss:$16 sps:$4 sm:$0xff]  }
  0x96   :  { %1413 = vmatpush2.bf16.msra.mxu0 %v2454_v22  ;;  %v2541_v22 = vld [vmem:[#allocation2 + $0x588] ss:$16 sps:$4 sm:$0xff]  }
  0x97   :  { %1491 = vmatpush2.bf16.msra.mxu1 %v2451_v21  ;;  %1414 = vmatprep.subr.bf16.mxu0 %v2462_v24  ;;  %v2546_v21 = vld [vmem:[#allocation2 + $0x34c] ss:$16 sps:$4 sm:$0xff]  }
  0x98   :  { %1492 = vmatprep.subr.bf16.mxu1 %v2459_v23  ;;  %v2544_v23 = vld [vmem:[#allocation2 + $0x348] ss:$16 sps:$4 sm:$0xff]   ;;  %v2549_v24 = vld [vmem:[#allocation2 + $0x56c] ss:$16 sps:$4 sm:$0xff]  }
  0x9a   :  { %1415 = vmatpush2.bf16.msra.mxu0 %v2460_v27  ;;  %v2547_v27 = vld [vmem:[#allocation2 + $0x568] ss:$16 sps:$4 sm:$0xff]  }
  0x9b   :  { %1493 = vmatpush2.bf16.msra.mxu1 %v2457_v25  ;;  %1507 = vmatprep.subr.bf16.mxu0 %v2468_v30  ;;  %v2552_v25 = vld [vmem:[#allocation2 + $0x32c] ss:$16 sps:$4 sm:$0xff]  }
  0x9c   :  { %1494 = vmatprep.subr.bf16.mxu1 %v2465_v28  ;;  %v2550_v28 = vld [vmem:[#allocation2 + $0x328] ss:$16 sps:$4 sm:$0xff]   ;;  %v2555_v30 = vld [vmem:[#allocation2 + $0x54c] ss:$16 sps:$4 sm:$0xff]  }
  0x9d   :  { %1417 = vmatmul.mubr.bf16.vlgmr.msra.gmra.mxu0 %v2730_v32 }
  0x9e   :  { %1508 = vmatpush1.bf16.msra.mxu0 %v2466_v34  ;;  %1539 = vmatprep.mubr.bf16.mxu0 %v2700_v3  ;;  %v2495_v3 = vld [vmem:[#allocation2 + $0x48c] ss:$16 sps:$4 sm:$0xff]   ;;  %v2553_v34 = vld [vmem:[#allocation2 + $0x548] ss:$16 sps:$4 sm:$0xff]  }
  0x9f   :  { %1495 = vmatpush2.bf16.msra.mxu1 %v2463_v33  ;;  %1509 = vmatprep.subr.bf16.mxu0 %v2474_v36  ;;  %v2558_v33 = vld [vmem:[#allocation2 + $0x30c] ss:$16 sps:$4 sm:$0xff]  }
  0xa0   :  { %1496 = vmatprep.subr.bf16.mxu1 %v2471_v35  ;;  %v2556_v35 = vld [vmem:[#allocation2 + $0x308] ss:$16 sps:$4 sm:$0xff]   ;;  %v2561_v36 = vld [vmem:[#allocation2 + $0x52c] ss:$16 sps:$4 sm:$0xff]  }
  0xa2   :  { %1510 = vmatpush1.bf16.msra.mxu0 %v2472_v38  ;;  %v2559_v38 = vld [vmem:[#allocation2 + $0x528] ss:$16 sps:$4 sm:$0xff]  }
  0xa3   :  { %1497 = vmatpush2.bf16.msra.mxu1 %v2469_v37  ;;  %1511 = vmatprep.subr.bf16.mxu0 %v2480_v40  ;;  %v2564_v37 = vld [vmem:[#allocation2 + $0x60c] ss:$16 sps:$4 sm:$0xff]  }
  0xa4   :  { %1548 = vmatprep.subr.bf16.mxu1 %v2477_v39  ;;  %v2562_v39 = vld [vmem:[#allocation2 + $0x608] ss:$16 sps:$4 sm:$0xff]   ;;  %v2567_v40 = vld [vmem:[#allocation2 + $0x50c] ss:$16 sps:$4 sm:$0xff]  }
  0xa6   :  { %1499 = vmatmul.mubr.bf16.vlgmr.msra.gmra.mxu1 %v2712_v19  ;;  %1512 = vmatpush1.bf16.msra.mxu0 %v2478_v41  ;;  %v2504_v19 = vld [vmem:[#allocation2 + $0x22c] ss:$16 sps:$4 sm:$0xff]   ;;  %v2565_v41 = vld [vmem:[#allocation2 + $0x508] ss:$16 sps:$4 sm:$0xff]  }
  0xa7   :  { %1549 = vmatpush1.bf16.msra.mxu1 %v2475_v13  ;;  %1513 = vmatprep.subr.bf16.mxu0 %v2486_v44  ;;  %v2568_v13 = vld [vmem:[#allocation4 + $0x78] sm:$0xff]   ;;  %v2570_v44 = vld [vmem:[#allocation4 + $0x70] sm:$0xff]  }
  0xa8   :  { %1550 = vmatprep.subr.bf16.mxu1 %v2483_v42  ;;  %1580 = vmatprep.mubr.bf16.mxu1 %v2716_v26  ;;  %v2505_v26 = vld [vmem:[#allocation2 + $0x448] ss:$16 sps:$4 sm:$0xff]  }
  0xa9   :  { %v2569_v42 = vld [vmem:[#allocation4 + $0x38] sm:$0xff]  }
  0xaa   :  { %1514 = vmatpush1.bf16.msra.mxu0 %v2484_v46  ;;  %v2572_v46 = vld [vmem:[#allocation4 + $0x68] sm:$0xff]  }
  0xab   :  { %1551 = vmatpush1.bf16.msra.mxu1 %v2481_v45  ;;  %1515 = vmatprep.subr.bf16.mxu0 %v2492_v48  ;;  %v2571_v45 = vld [vmem:[#allocation4 + $0x30] sm:$0xff]   ;;  %v2584_v48 = vld [vmem:[#allocation4 + $0xf8] sm:$0xff]  }
  0xac   :  { %1552 = vmatprep.subr.bf16.mxu1 %v2489_v47  ;;  %v2574_v47 = vld [vmem:[#allocation4 + $0x60] sm:$0xff]  }
  0xae   :  { %1516 = vmatpush1.bf16.msra.mxu0 %v2490_v50  ;;  %v2575_v50 = vld [vmem:[#allocation4 + $0x20] sm:$0xff]  }
  0xaf   :  { %1553 = vmatpush1.bf16.msra.mxu1 %v2487_v49  ;;  %1517 = vmatprep.subr.bf16.mxu0 %v2498_v51  ;;  %v2585_v49 = vld [vmem:[#allocation4 + $0xb8] sm:$0xff]  }
  0xb0   :  { %1554 = vmatprep.subr.bf16.mxu1 %v2495_v3  ;;  %v2587_v3 = vld [vmem:[#allocation4 + $0xb0] sm:$0xff]   ;;  %v2577_v51 = vld [vmem:[#allocation4 + $0x18] sm:$0xff]  }
  0xb2   :  { %1518 = vmatpush1.bf16.msra.mxu0 %v2496_v53  ;;  %v2578_v53 = vld [vmem:[#allocation4 + $0x50] sm:$0xff]  }
  0xb3   :  { %1555 = vmatpush1.bf16.msra.mxu1 %v2493_v52  ;;  %1519 = vmatprep.subr.bf16.mxu0 %v2504_v19  ;;  %v2589_v52 = vld [vmem:[#allocation4 + $0xa8] sm:$0xff]   ;;  %v2579_v19 = vld [vmem:[#allocation4 + $0x10] sm:$0xff]  }
  0xb4   :  { %1556 = vmatprep.subr.bf16.mxu1 %v2501_v54  ;;  %v2590_v54 = vld [vmem:[#allocation4 + $0xe0] sm:$0xff]  }
  0xb6   :  { %1520 = vmatpush1.bf16.msra.mxu0 %v2502_v56  ;;  %v2581_v56 = vld [vmem:[#allocation4 + $0x8] sm:$0xff]  }
  0xb7   :  { %1557 = vmatpush1.bf16.msra.mxu1 %v2499_v55  ;;  %1521 = vmatprep.subr.bf16.mxu0 %v2510_v58  ;;  %v2580_v55 = vld [vmem:[#allocation4 + $0x48] sm:$0xff]   ;;  %v2583_v58 = vld [vmem:[#allocation4] sm:$0xff]  }
  0xb8   :  { %1558 = vmatprep.subr.bf16.mxu1 %v2507_v57  ;;  %v2582_v57 = vld [vmem:[#allocation4 + $0x40] sm:$0xff]  }
  0xba   :  { %1522 = vmatpush1.bf16.msra.mxu0 %v2508_v59 }
  0xbb   :  { %1559 = vmatpush1.bf16.msra.mxu1 %v2505_v26  ;;  %1523 = vmatprep.subr.bf16.mxu0 %v2516_v61  ;;  %v2591_v26 = vld [vmem:[#allocation4 + $0xa0] sm:$0xff]  }
  0xbc   :  { %1560 = vmatprep.subr.bf16.mxu1 %v2513_v60 }
  0xbe   :  { %1524 = vmatpush2.bf16.msra.mxu0 %v2514_v63  ;;  %v2592_v63 = vld [vmem:[#allocation4 + $0xd8] sm:$0xff]  }
  0xbf   :  { %1561 = vmatpush1.bf16.msra.mxu1 %v2511_v62  ;;  %1525 = vmatprep.subr.bf16.mxu0 %v2522_v1 }
  0xc0   :  { %1562 = vmatprep.subr.bf16.mxu1 %v2519_v0  ;;  %v2593_v0 = vld [vmem:[#allocation4 + $0x98] sm:$0xff]  }
  0xc2   :  { %1526 = vmatpush2.bf16.msra.mxu0 %v2520_v4 }
  0xc3   :  { %1563 = vmatpush1.bf16.msra.mxu1 %v2517_v2  ;;  %1527 = vmatprep.subr.bf16.mxu0 %v2528_v6  ;;  %v2594_v6 = vld [vmem:[#allocation4 + $0xd0] sm:$0xff]  }
  0xc4   :  { %1564 = vmatprep.subr.bf16.mxu1 %v2525_v5 }
  0xc6   :  { %1528 = vmatpush2.bf16.msra.mxu0 %v2526_v8 }
  0xc7   :  { %1565 = vmatpush2.bf16.msra.mxu1 %v2523_v7  ;;  %1529 = vmatprep.subr.bf16.mxu0 %v2534_v10  ;;  %v2595_v7 = vld [vmem:[#allocation4 + $0x90] sm:$0xff]   ;;  %v2596_v10 = vld [vmem:[#allocation4 + $0xc8] sm:$0xff]  }
  0xc8   :  { %1566 = vmatprep.subr.bf16.mxu1 %v2531_v9 }
  0xca   :  { %1530 = vmatpush2.bf16.msra.mxu0 %v2532_v12 }
  0xcb   :  { %1567 = vmatpush2.bf16.msra.mxu1 %v2529_v11  ;;  %1531 = vmatprep.subr.bf16.mxu0 %v2540_v15  ;;  %v2597_v11 = vld [vmem:[#allocation4 + $0x88] sm:$0xff]   ;;  %v2598_v15 = vld [vmem:[#allocation4 + $0xc0] sm:$0xff]  }
  0xcc   :  { %1568 = vmatprep.subr.bf16.mxu1 %v2537_v14 }
  0xce   :  { %1532 = vmatpush2.bf16.msra.mxu0 %v2538_v17  ;;  %v300_v17 = vsub.s32 0, %v2688_v43 }
  0xcf   :  { %1569 = vmatpush2.bf16.msra.mxu1 %v2535_v16  ;;  %1533 = vmatprep.subr.bf16.mxu0 %v2546_v21  ;;  %v2599_v16 = vld [vmem:[#allocation4 + $0x80] sm:$0xff]   ;;  %v304_v21 = vsub.s32 1, %v2688_v43 }
  0xd0   :  { %1570 = vmatprep.subr.bf16.mxu1 %v2543_v18  ;;  %v296_v18 = vld [vmem:[%s2756_s2] sm:$0xf] }
  0xd2   :  { %1534 = vmatpush2.bf16.msra.mxu0 %v2544_v23  ;;  %v305_v23 = vrot.slane %v296_v18, %v304_v21 }
  0xd3   :  { %1571 = vmatpush2.bf16.msra.mxu1 %v2541_v22  ;;  %1535 = vmatprep.subr.bf16.mxu0 %v2552_v25  ;;  %v301_v22 = vrot.slane %v296_v18, %v300_v17 }
  0xd4   :  { %1572 = vmatprep.subr.bf16.mxu1 %v2549_v24 }
  0xd6   :  { %1536 = vmatpush2.bf16.msra.mxu0 %v2550_v28 }
  0xd7   :  { %1573 = vmatpush2.bf16.msra.mxu1 %v2547_v27  ;;  %1537 = vmatprep.subr.bf16.mxu0 %v2558_v33 }
  0xd8   :  { %1574 = vmatprep.subr.bf16.mxu1 %v2555_v30 }
  0xda   :  { %1538 = vmatpush2.bf16.msra.mxu0 %v2556_v35 }
  0xdb   :  { %1575 = vmatpush2.bf16.msra.mxu1 %v2553_v34  ;;  %1603 = vmatprep.subr.bf16.mxu0 %v2564_v37 }
  0xdc   :  { %1576 = vmatprep.subr.bf16.mxu1 %v2561_v36 }
  0xdd   :  { %1540 = vmatmul.mubr.bf16.vlgmr.msra.gmra.mxu0 %v2714_v20  ;;  %v2573_v20 = vld [vmem:[#allocation4 + $0x28] sm:$0xff]  }
  0xde   :  { %1604 = vmatpush1.bf16.msra.mxu0 %v2562_v39  ;;  %1621 = vmatprep.mubr.bf16.mxu0 %v2651_v29  ;;  %v2586_v29 = vld [vmem:[#allocation4 + $0xf0] sm:$0xff]  }
  0xdf   :  { %1577 = vmatpush2.bf16.msra.mxu1 %v2559_v38  ;;  %2220 = vmatprep.subr.bf16.mxu0 %v2568_v13 }
  0xe0   :  { %1578 = vmatprep.subr.bf16.mxu1 %v2567_v40 }
  0xe3   :  { %1579 = vmatpush2.bf16.msra.mxu1 %v2565_v41 }
  0xe4   :  { %2242 = vmatprep.subr.bf16.mxu1 %v2584_v48  ;;  %v312_v48 = vsub.s32 3, %v2688_v43 }
  0xe5   :  { %2186 = vmatmul.mubr.msk.bf16.vlgmr.msra.gmra.mxu0 %vm1298_vm0, %v2723_v31  ;;  %v2588_v31 = vld [vmem:[#allocation4 + $0xe8] sm:$0xff]  }
  0xe6   :  { %1581 = vmatmul.mubr.bf16.vlgmr.msra.gmra.mxu1 %v2730_v32  ;;  %2221 = vmatpush3.bf16.msra.mxu0 %v2569_v42  ;;  %v2576_v32 = vld [vmem:[#allocation4 + $0x58] sm:$0xff]  }
  0xe7   :  { %2222 = vmatprep.subr.bf16.mxu0 %v2570_v44  ;;  %2243 = vmatpush3.bf16.msra.mxu1 %v2585_v49 }
  0xe8   :  { %2244 = vmatprep.subr.bf16.mxu1 %v2586_v29 }
  0xea   :  { %2223 = vmatpush3.bf16.msra.mxu0 %v2571_v45 }
  0xeb   :  { %2224 = vmatprep.subr.bf16.mxu0 %v2572_v46  ;;  %2245 = vmatpush3.bf16.msra.mxu1 %v2587_v3  ;;  %v313_v3 = vrot.slane %v296_v18, %v312_v48 }
  0xec   :  { %2246 = vmatprep.subr.bf16.mxu1 %v2588_v31 }
  0xee   :  { %2225 = vmatpush3.bf16.msra.mxu0 %v2573_v20 }
  0xef   :  { %2226 = vmatprep.subr.bf16.mxu0 %v2574_v47  ;;  %2247 = vmatpush3.bf16.msra.mxu1 %v2589_v52  ;;  %v308_v47 = vsub.s32 2, %v2688_v43 }
  0xf0   :  { %2248 = vmatprep.subr.bf16.mxu1 %v2590_v54 }
  0xf1   :  { %v309_v29 = vrot.slane %v296_v18, %v308_v47 }
  0xf2   :  { %2227 = vmatpush3.bf16.msra.mxu0 %v2575_v50 }
  0xf3   :  { %2228 = vmatprep.subr.bf16.mxu0 %v2576_v32  ;;  %2249 = vmatpush3.bf16.msra.mxu1 %v2591_v26 }
  0xf4   :  { %2250 = vmatprep.subr.bf16.mxu1 %v2592_v63 }
  0xf6   :  { %2229 = vmatpush3.bf16.msra.mxu0 %v2577_v51 }
  0xf7   :  { %2230 = vmatprep.subr.bf16.mxu0 %v2578_v53  ;;  %2251 = vmatpush3.bf16.msra.mxu1 %v2593_v0 }
  0xf8   :  { %2252 = vmatprep.subr.bf16.mxu1 %v2594_v6 }
  0xfa   :  { %2231 = vmatpush3.bf16.msra.mxu0 %v2579_v19 }
  0xfb   :  { %2232 = vmatprep.subr.bf16.mxu0 %v2580_v55  ;;  %2253 = vmatpush3.bf16.msra.mxu1 %v2595_v7 }
  0xfc   :  { %2254 = vmatprep.subr.bf16.mxu1 %v2596_v10  ;;  %v2187_v10 = vld [vmem:[%s2758_s4] ss:$0 sm:$0xff] }
  0xfe   :  { %2233 = vmatpush3.bf16.msra.mxu0 %v2581_v56 }
  0xff   :  { %2234 = vmatprep.subr.bf16.mxu0 %v2582_v57  ;;  %2255 = vmatpush3.bf16.msra.mxu1 %v2597_v11 }
 0x100   :  { %2256 = vmatprep.subr.bf16.mxu1 %v2598_v15 }
 0x102   :  { %2235 = vmatpush3.bf16.msra.mxu0 %v2583_v58 }
 0x103   :  { %2257 = vmatpush3.bf16.msra.mxu1 %v2599_v16 }
 0x11d   :  { %v1336_v59 = vpop.f32.mrf.mxu0 }
 0x11e   :  { %v1377_v60 = vpop.f32.mrf.mxu1  ;;  %v1337_v24 = vadd.f32 %v1336_v59, %v301_v22 }
 0x11f   :  { %v1338_v61 = vpop.f32.mrf.mxu0 }
 0x120   :  { %v1379_v62 = vpop.f32.mrf.mxu1  ;;  %v1339_v25 = vadd.f32 %v1338_v61, %v305_v23  ;;  %v1378_v27 = vadd.f32 %v1377_v60, %v1337_v24 }
 0x121   :  { %v1340_v1 = vpop.f32.mrf.mxu0 }
 0x122   :  { %v1381_v2 = vpop.f32.mrf.mxu1  ;;  %v1380_v30 = vadd.f32 %v1379_v62, %v1339_v25 }
 0x123   :  { %v1341_v4 = vpop.f32.mrf.mxu0 }
 0x124   :  { %v1382_v5 = vpop.f32.mrf.mxu1 }
 0x126   :  { %v1459_v8 = vpop.f32.mrf.mxu1 }
 0x128   :  { %v1461_v9 = vpop.f32.mrf.mxu1 }
 0x12a   :  { %v1463_v12 = vpop.f32.mrf.mxu1 }
 0x12c   :  { %v1464_v14 = vpop.f32.mrf.mxu1 }
 0x15d   :  { %v1418_v28 = vpop.f32.mrf.mxu0 }
 0x15e   :  { %v1419_v33 = vadd.f32 %v1418_v28, %v1378_v27 }
 0x15f   :  { %v1420_v34 = vpop.f32.mrf.mxu0 }
 0x160   :  { %v1460_v35 = vadd.f32 %v1459_v8, %v1419_v33  ;;  %v1421_v36 = vadd.f32 %v1420_v34, %v1380_v30 }
 0x161   :  { %v1422_v37 = vpop.f32.mrf.mxu0 }
 0x162   :  { %v1462_v38 = vadd.f32 %v1461_v9, %v1421_v36  ;;  %v1630_v39 = vmax.f32 %v1460_v35, 0.0 }
 0x163   :  { %v1423_v40 = vpop.f32.mrf.mxu0 }
 0x164   :  { %v1631_v13 = vmax.f32 %v1462_v38, 0.0  ;;  %v1634_v44 = vpack.c.bf16 %v1630_v39, %v1630_v39 }
 0x166   :  { %v1500_v41 = vpop.f32.mrf.mxu1  ;;  %v1635_v42 = vpack.c.bf16 %v1631_v13, %v1631_v13 }
 0x167   :  { %v1501_v31 = vadd.f32 %v1500_v41, %v309_v29 }
 0x168   :  { %v1502_v45 = vpop.f32.mrf.mxu1  ;;  %1933 = vmatprep.mubr.bf16.mxu0 %v1635_v42 }
 0x169   :  { %1934 = vmatmul.mubr.bf16.vlgmr.msra.gmra.mxu0 %v1634_v44  ;;  %v1503_v52 = vadd.f32 %v1502_v45, %v313_v3 }
 0x16a   :  { %v1504_v46 = vpop.f32.mrf.mxu1 }
 0x16c   :  { %v1505_v20 = vpop.f32.mrf.mxu1 }
 0x19d   :  { %v1541_v49 = vpop.f32.mrf.mxu0 }
 0x19e   :  { %v1542_v53 = vadd.f32 %v1541_v49, %v1501_v31 }
 0x19f   :  { %v1543_v50 = vpop.f32.mrf.mxu0 }
 0x1a0   :  { %v1544_v55 = vadd.f32 %v1543_v50, %v1503_v52 }
 0x1a1   :  { %v1545_v32 = vpop.f32.mrf.mxu0 }
 0x1a3   :  { %v1546_v51 = vpop.f32.mrf.mxu0 }
 0x1a5   :  { %v1623_v19 = vpop.f32.mrf.mxu0 }
 0x1a6   :  { %v1582_v54 = vpop.f32.mrf.mxu1 }
 0x1a7   :  { %v1583_v56 = vadd.f32 %v1582_v54, %v1542_v53  ;;  %v1625_v58 = vpop.f32.mrf.mxu0 }
 0x1a8   :  { %v1584_v57 = vpop.f32.mrf.mxu1 }
 0x1a9   :  { %v1624_v26 = vadd.f32 %v1623_v19, %v1583_v56  ;;  %v1585_v59 = vadd.f32 %v1584_v57, %v1544_v55  ;;  %v1627_v61 = vpop.f32.mrf.mxu0 }
 0x1aa   :  { %v1586_v60 = vpop.f32.mrf.mxu1 }
 0x1ab   :  { %v1626_v43 = vadd.f32 %v1625_v58, %v1585_v59  ;;  %v1632_v62 = vmax.f32 %v1624_v26, 0.0  ;;  %v1628_v0 = vpop.f32.mrf.mxu0 }
 0x1ac   :  { %v1587_v63 = vpop.f32.mrf.mxu1 }
 0x1ad   :  { %v1633_v1 = vmax.f32 %v1626_v43, 0.0  ;;  %v1636_v4 = vpack.c.bf16 %v1632_v62, %v1632_v62 }
 0x1af   :  { %v1637_v2 = vpack.c.bf16 %v1633_v1, %v1633_v1 }
 0x1b1   :  { %1973 = vmatprep.mubr.bf16.mxu1 %v1637_v2 }
 0x1b2   :  { %1974 = vmatmul.mubr.bf16.vlgmr.msra.gmra.mxu1 %v1636_v4 }
 0x229   :  { %v2236_v5 = vpop.f32.mrf.mxu0 }
 0x22b   :  { %v2237_v6 = vpop.f32.mrf.mxu0 }
 0x22c   :  { %v2238_v7 = vadd.f32 %v2237_v6, %v2236_v5 }
 0x22d   :  { %v2239_v8 = vpop.f32.mrf.mxu0 }
 0x22e   :  { %v1936_v14 = vadd.f32 %v2238_v7, %v2187_v10 }
 0x22f   :  { %v2240_v9 = vpop.f32.mrf.mxu0 }
 0x272   :  { %v2258_v11 = vpop.f32.mrf.mxu1 }
 0x274   :  { %v2259_v12 = vpop.f32.mrf.mxu1 }
 0x275   :  { %v2260_v15 = vadd.f32 %v2259_v12, %v2258_v11 }
 0x276   :  { %v2261_v16 = vpop.f32.mrf.mxu1 }
 0x277   :  { %v1976_v17 = vadd.f32 %v2260_v15, %v1936_v14 }
 0x278   :  { %v2262_v18 = vpop.f32.mrf.mxu1 }
 0x279   :  { %v1981_v21 = vpack.c.bf16 %v1976_v17, %v1976_v17 }
 0x27b   :  { %1982 = vst [vmem:[%s2759_s5] sm:$0x1] %v1981_v21 }
 0x27c   :  { %1987 = vsyncpa [#allocation3], 1 }
 0x27d   :  { %1988 = vsyncpa [#allocation5], 1 }

</bundles_post_ra>
